<compile_context>
chip_gen: v6e
topology: v6e:2x2x1
jax: 0.10.0
libtpu: 0.0.40
codegen_flags: <defaults>
</compile_context>

<pallas_src>
import math

import jax
import jax.numpy as jnp
from jax import lax
from jax.experimental import pallas as pl
from jax.experimental.pallas import tpu as pltpu


def _round_up(x, mult):
    return ((x + mult - 1) // mult) * mult


def _fc_gelu_kernel(x_ref, w_ref, b_ref, o_ref):
    # x: (TM, K), w: (K, Np) [VMEM-resident, possibly bf16], b: (1, Np) f32.
    w = w_ref[...]
    x = x_ref[...].astype(w.dtype)              # cast operands for the MXU
    y = jnp.dot(x, w, preferred_element_type=jnp.float32)
    y = y + b_ref[...]                          # f32 bias add (broadcast (1,Np)->(TM,Np))
    # Exact (erf-based) GELU, matching torch.nn.GELU() default.
    # TODO(synk): tanh-approx GELU would move the transcendental to the EUP slot,
    # but the module spec is exact-erf GELU, so keep it.
    inv_sqrt2 = 0.7071067811865476
    g = 0.5 * y * (1.0 + lax.erf(y * inv_sqrt2))
    o_ref[...] = g.astype(o_ref.dtype)


def prepare_fc_params(weight, bias, *, use_bf16_matmul=True):
    """One-time parameter prep (do NOT call per forward step).

    weight: (item_dim, word_dim) in PyTorch layout; bias: (item_dim,).
    Returns (w_kn, b_1n, item_dim) where w_kn is (word_dim, n_pad) with n_pad a
    multiple of 128 (zero-padded columns), optionally stored in bf16, and b_1n
    is (1, n_pad) float32.
    """
    n, k = weight.shape
    n_pad = _round_up(n, 128)
    w_dtype = jnp.bfloat16 if use_bf16_matmul else weight.dtype
    w_kn = jnp.zeros((k, n_pad), dtype=w_dtype)
    w_kn = w_kn.at[:, :n].set(weight.T.astype(w_dtype))
    b_1n = jnp.zeros((1, n_pad), dtype=jnp.float32)
    b_1n = b_1n.at[:, :n].set(bias.astype(jnp.float32))
    return w_kn, b_1n, n


def fc_layers_forward(sample_items, w_kn, b_1n, item_dim, *, block_m=512):
    """sample_items: (..., word_dim); w_kn/b_1n from prepare_fc_params.
    Returns (..., item_dim)."""
    *lead, k = sample_items.shape
    kw, n_pad = w_kn.shape
    assert kw == k, f"word_dim mismatch: {kw} vs {k}"

    x2d = sample_items.reshape(-1, k)
    m = x2d.shape[0]
    out_dtype = sample_items.dtype

    # Choose an M tile: big enough to hit the HBM roofline, bounded by M itself,
    # sublane-aligned (multiple of 8).
    tm = min(block_m, _round_up(m, 8))
    tm = max(8, _round_up(tm, 8))
    m_pad = _round_up(m, tm)
    if m_pad != m:
        x2d = jnp.pad(x2d, ((0, m_pad - m), (0, 0)))
    grid_m = m_pad // tm

    itemsize_x = jnp.dtype(x2d.dtype).itemsize
    itemsize_w = jnp.dtype(w_kn.dtype).itemsize
    itemsize_o = jnp.dtype(out_dtype).itemsize

    # VMEM budget: double-buffered x and out tiles + resident weight + bias.
    vmem_needed = (2 * tm * k * itemsize_x
                   + 2 * tm * n_pad * itemsize_o
                   + k * n_pad * itemsize_w
                   + n_pad * 4)
    vmem_limit = int(min(max(2 * vmem_needed + (4 << 20), 32 << 20), 60 << 20))

    cost = pl.CostEstimate(
        flops=2 * m_pad * k * n_pad,
        transcendentals=m_pad * n_pad,
        bytes_accessed=(m_pad * k * itemsize_x
                        + k * n_pad * itemsize_w
                        + n_pad * 4
                        + m_pad * n_pad * itemsize_o),
    )

    out = pl.pallas_call(
        _fc_gelu_kernel,
        out_shape=jax.ShapeDtypeStruct((m_pad, n_pad), out_dtype),
        grid_spec=pltpu.PrefetchScalarGridSpec(
            num_scalar_prefetch=0,
            grid=(grid_m,),
            in_specs=[
                pl.BlockSpec((tm, k), lambda i: (i, 0)),      # streamed x tiles
                pl.BlockSpec((k, n_pad), lambda i: (0, 0)),   # weight: VMEM-resident
                pl.BlockSpec((1, n_pad), lambda i: (0, 0)),   # bias: VMEM-resident
            ],
            out_specs=pl.BlockSpec((tm, n_pad), lambda i: (i, 0)),
        ),
        compiler_params=pltpu.CompilerParams(
            dimension_semantics=("parallel",),
            vmem_limit_bytes=vmem_limit,
        ),
        cost_estimate=cost,
    )(x2d, w_kn, b_1n)

    return out[:m, :item_dim].reshape(*lead, item_dim)


def init_fc_layers_params(key, word_embedding_dim, item_embedding_dim):
    # xavier_normal_: std = sqrt(2 / (fan_in + fan_out)); bias = 0.
    std = math.sqrt(2.0 / (word_embedding_dim + item_embedding_dim))
    weight = std * jax.random.normal(
        key, (item_embedding_dim, word_embedding_dim), dtype=jnp.float32
    )
    bias = jnp.zeros((item_embedding_dim,), dtype=jnp.float32)
    return weight, bias


def _ref_fc_gelu(x, weight, bias):
    y = x @ weight.T + bias
    return 0.5 * y * (1.0 + lax.erf(y / math.sqrt(2.0)))


if __name__ == "__main__":
    key = jax.random.PRNGKey(0)
    k_x, k_w, k_b = jax.random.split(key, 3)

    batch, seq = 2, 8
    word_embedding_dim, item_embedding_dim = 32, 64

    sample_items = jax.random.normal(
        k_x, (batch, seq, word_embedding_dim), dtype=jnp.float32
    )
    weight, bias = init_fc_layers_params(k_w, word_embedding_dim, item_embedding_dim)

    # bf16 MXU operands (f32 accumulation) — tolerance loosened accordingly.
    w_kn, b_1n, n_out = prepare_fc_params(weight, bias, use_bf16_matmul=True)
    out = fc_layers_forward(sample_items, w_kn, b_1n, n_out)
    jax.block_until_ready(out)

    ref = _ref_fc_gelu(sample_items, weight, bias)
    assert out.shape == (batch, seq, item_embedding_dim)
    assert jnp.allclose(out, ref, atol=2e-2, rtol=2e-2), float(
        jnp.max(jnp.abs(out - ref))
    )

    # Exercise the non-zero-bias path too (same shapes -> same compiled kernel).
    bias2 = 0.1 * jax.random.normal(k_b, (item_embedding_dim,), dtype=jnp.float32)
    w_kn2, b_1n2, _ = prepare_fc_params(weight, bias2, use_bf16_matmul=True)
    out2 = fc_layers_forward(sample_items, w_kn2, b_1n2, n_out)
    jax.block_until_ready(out2)
    ref2 = _ref_fc_gelu(sample_items, weight, bias2)
    assert jnp.allclose(out2, ref2, atol=2e-2, rtol=2e-2), float(
        jnp.max(jnp.abs(out2 - ref2))
    )

    print("KERNEL_OK")
</pallas_src>

<mosaic_0001>
module attributes {stable_mosaic.version = 11 : i64} {
  func.func @_fc_gelu_kernel(%arg0: i32, %arg1: memref<16x32xf32, #tpu.memory_space<vmem>>, %arg2: memref<32x128xbf16, #tpu.memory_space<vmem>>, %arg3: memref<1x128xf32, #tpu.memory_space<vmem>>, %arg4: memref<16x128xf32, #tpu.memory_space<vmem>>) attributes {dimension_semantics = [#tpu.dimension_semantics<parallel>], iteration_bounds = array<i64: 1>, scalar_prefetch = 0 : i64, scratch_operands = 0 : i64, tpu.core_type = #tpu.core_type<tc>, window_params = [{transform_indices = @transform_0, window_bounds = array<i64: 16, 32>}, {pipeline_mode = #tpu.pipeline_mode<synchronous>, transform_indices = @transform_1, window_bounds = array<i64: 32, 128>}, {pipeline_mode = #tpu.pipeline_mode<synchronous>, transform_indices = @transform_2, window_bounds = array<i64: 1, 128>}, {transform_indices = @transform_3, window_bounds = array<i64: 16, 128>}]} {
    %c0 = arith.constant 0 : index
    %c0_0 = arith.constant 0 : index
    %0 = vector.load %arg2[%c0, %c0_0] : memref<32x128xbf16, #tpu.memory_space<vmem>>, vector<32x128xbf16>
    %c0_1 = arith.constant 0 : index
    %c0_2 = arith.constant 0 : index
    %1 = vector.load %arg1[%c0_1, %c0_2] : memref<16x32xf32, #tpu.memory_space<vmem>>, vector<16x32xf32>
    %2 = arith.truncf %1 : vector<16x32xf32> to vector<16x32xbf16>
    %cst = arith.constant dense<0.000000e+00> : vector<16x128xf32>
    %3 = tpu.matmul %2, %0, %cst {dimension_numbers = #tpu.dot_dimension_numbers<[1], [0], [0], [1], [0, 0, 1, 1], [], []>} : vector<16x32xbf16>, vector<32x128xbf16>, vector<16x128xf32> -> vector<16x128xf32>
    %c0_3 = arith.constant 0 : index
    %c0_4 = arith.constant 0 : index
    %4 = vector.load %arg3[%c0_3, %c0_4] : memref<1x128xf32, #tpu.memory_space<vmem>>, vector<1x128xf32>
    %5 = vector.broadcast %4 : vector<1x128xf32> to vector<16x128xf32>
    %6 = arith.addf %3, %5 : vector<16x128xf32>
    %cst_5 = arith.constant 5.000000e-01 : f32
    %7 = vector.broadcast %cst_5 : f32 to vector<16x128xf32>
    %8 = arith.mulf %7, %6 : vector<16x128xf32>
    %cst_6 = arith.constant 0.707106769 : f32
    %9 = vector.broadcast %cst_6 : f32 to vector<16x128xf32>
    %10 = arith.mulf %6, %9 : vector<16x128xf32>
    %11 = math.erf %10 : vector<16x128xf32>
    %cst_7 = arith.constant 1.000000e+00 : f32
    %12 = vector.broadcast %cst_7 : f32 to vector<16x128xf32>
    %13 = arith.addf %12, %11 : vector<16x128xf32>
    %14 = arith.mulf %8, %13 : vector<16x128xf32>
    %c0_8 = arith.constant 0 : index
    %c0_9 = arith.constant 0 : index
    %15 = vector.load %arg4[%c0_8, %c0_9] : memref<16x128xf32, #tpu.memory_space<vmem>>, vector<16x128xf32>
    tpu.vector_store %arg4[%c0_8, %c0_9], %14 {strides = array<i32>} : memref<16x128xf32, #tpu.memory_space<vmem>>, vector<16x128xf32>,
    return
  }
  func.func @transform_0(%arg0: i32) -> (i32, i32) {
    %c0_i32 = arith.constant 0 : i32
    %c0_i32_0 = arith.constant 0 : i32
    return %arg0, %c0_i32 : i32, i32
  }
  func.func @transform_1(%arg0: i32) -> (i32, i32) {
    %c0_i32 = arith.constant 0 : i32
    %c0_i32_0 = arith.constant 0 : i32
    %c0_i32_1 = arith.constant 0 : i32
    return %c0_i32, %c0_i32_0 : i32, i32
  }
  func.func @transform_2(%arg0: i32) -> (i32, i32) {
    %c0_i32 = arith.constant 0 : i32
    %c0_i32_0 = arith.constant 0 : i32
    %c0_i32_1 = arith.constant 0 : i32
    return %c0_i32, %c0_i32_0 : i32, i32
  }
  func.func @transform_3(%arg0: i32) -> (i32, i32) {
    %c0_i32 = arith.constant 0 : i32
    %c0_i32_0 = arith.constant 0 : i32
    return %arg0, %c0_i32 : i32, i32
  }
}

</mosaic_0001>

<bundles_post_ra>
// kernel: tpu_custom_call.1
= control target key start
LH: loop header
LB: loop body
LE: loop exit
PB: predicated region body
PF: predicated region fallthrough
CT: control target
= control target key end

     0   :  { %8 = vsyncpa [#allocation3], 0  ;;  %s288_s0 = inlined_call_operand.hbm [shape: f32[16,32], index: 0, kind: input, shape index: {}]   ;;  %s289_s1 = inlined_call_operand.hbm [shape: bf16[32,128], index: 1, kind: input, shape index: {}]   ;;  %s290_s2 = inlined_call_operand.vmem [shape: f32[1,128], index: 2, kind: input, shape index: {}]   ;;  %s291_s3 = inlined_call_operand.hbm [shape: f32[16,128], index: 3, kind: output, shape index: {}]  }
   0x1   :  { %9 = vsyncpa [#allocation6], 0 }
   0x2   :  { %10 = vsyncpa [#allocation4], 0  ;;  %s241_s12 = smov [#allocation2]  }
   0x3   :  { %s16_s13 = sshll.u32 %s241_s12, 4  ;;  %s17_s13 = int_to_ptr.vmem [resolvable:$true] %s16_s13 }
   0x4   :  { %s183_s14 = scalar_lea.vmem %s17_s13, 256  ;;  %p188_p1 = scmp.lt.s32.totalorder %s17_s13, %s17_s13 }
   0x5   :  { %p184_p0 = scmp.ne.s32.totalorder %s17_s13, %s183_s14  ;;  %p189_p2 = scmp.lt.s32.totalorder %s183_s14, %s183_s14 }
   0x7   :  { %p190_p3 = por %p189_p2, %p188_p1 }
   0x9   :  { %p191_p4 = pnand %p190_p3, %p184_p0 }
   0xb   :  { %194 = shalt.err (!%p191_p4)
}
   0xc   :  { %s242_s15 = smov 128   ;;  %s243_s16 = smov 8  }
   0xd   :  { %22 = dma.hbm_to_vmem [thread:$0]  %s288_s0, 256, %s17_s13, [#allocation3], %s242_s15, %s242_s15, %s243_s16  }
   0xe   :  { %s244_s19 = smov [#allocation5]  }
   0xf   :  { %s28_s20 = sshll.u32 %s244_s19, 4  ;;  %s29_s20 = int_to_ptr.vmem [resolvable:$true] %s28_s20 }
  0x10   :  { %s203_s21 = scalar_lea.vmem %s29_s20, 256  ;;  %p208_p6 = scmp.lt.s32.totalorder %s29_s20, %s29_s20 }
  0x11   :  { %p204_p5 = scmp.ne.s32.totalorder %s29_s20, %s203_s21  ;;  %p209_p7 = scmp.lt.s32.totalorder %s203_s21, %s203_s21 }
  0x13   :  { %p210_p8 = por %p209_p7, %p208_p6 }
  0x15   :  { %p211_p9 = pnand %p210_p8, %p204_p5 }
  0x17   :  { %214 = shalt.err (!%p211_p9)
}
  0x18   :  { %s245_s22 = smov 64   ;;  %s246_s23 = smov 4  }
  0x19   :  { %34 = dma.hbm_to_vmem [thread:$0]  %s289_s1, 256, %s29_s20, [#allocation6], %s245_s22, %s245_s22, %s246_s23  }
  0x1a   :  { %235 = dma.done.wait [#allocation3], 256  }
  0x1b   :  { %236 = vsyncadd [#allocation3], 4294967040 }
  0x1c   :  { %237 = dma.done.wait [#allocation6], 256  }
  0x1d   :  { %238 = vsyncadd [#allocation6], 4294967040  ;;  %v247_v0 = vmov 0.0   ;;  %vm248_vm0 = vmmov 0   ;;  %v169_v1 = vld [vmem:[#allocation5 + $0x8] sm:$0xff]   ;;  %v170_v2 = vld [vmem:[#allocation5] sm:$0xff]  }
  0x1e   :  { %152 = vmatprep.subr.bf16.mxu0 %v247_v0  ;;  %156 = vmatprep.mubr.msk.bf16.mxu0 %vm248_vm0, %v247_v0  ;;  %v48_v3 = vld [vmem:[#allocation2] sm:$0xff]  ;;  %v49_v4 = vld [vmem:[#allocation2 + $0x8] sm:$0xff]  ;;  %vm70_vm1 = vcmask 261120   ;;  %s249_s26 = smov [#allocation7]  }
  0x1f   :  { %153 = vmatpush3.bf16.msra.mxu0 %v169_v1  ;;  %v50_v5 = vpack.c.bf16 %v49_v4, %v48_v3  ;;  %v145_v6 = vld [vmem:[%s290_s2] ss:$0 sm:$0xff]  ;;  %s132_s27 = sshll.u32 %s249_s26, 4  ;;  %s133_s27 = int_to_ptr.vmem [resolvable:$true] %s132_s27 }
  0x20   :  { %154 = vmatprep.subr.bf16.mxu0 %v247_v0  ;;  %s215_s2 = scalar_lea.vmem %s133_s27, 256  ;;  %p220_p11 = scmp.lt.s32.totalorder %s133_s27, %s133_s27 }
  0x21   :  { %p216_p10 = scmp.ne.s32.totalorder %s133_s27, %s215_s2  ;;  %p221_p12 = scmp.lt.s32.totalorder %s215_s2, %s215_s2 }
  0x23   :  { %155 = vmatpush3.bf16.msra.mxu0 %v170_v2  ;;  %p222_p13 = por %p221_p12, %p220_p11 }
  0x25   :  { %p223_p0 = pnand %p222_p13, %p216_p10 }
  0x26   :  { %157 = vmatmul.mubr.msk.bf16.vlgmr.msra.gmra.mxu0 %vm70_vm1, %v50_v5 }
  0xe6   :  { %v108_v7 = vpop.f32.mrf.mxu0 }
  0xe7   :  { %v109_v8 = vadd.f32 %v145_v6, %v108_v7 }
  0xe8   :  { %v158_v9 = vpop.f32.mrf.mxu0 }
  0xe9   :  { %v117_v10 = vmul.f32 0.70710677, %v109_v8  ;;  %v115_v16 = vmul.f32 0.5, %v109_v8 }
  0xea   :  { %v111_v11 = vpop.f32.mrf.mxu0 }
  0xeb   :  { %171 = verf.f32 %v117_v10  ;;  %v112_v12 = vadd.f32 %v145_v6, %v111_v11 }
  0xec   :  { %v159_v13 = vpop.f32.mrf.mxu0 }
  0xed   :  { %v118_v14 = vmul.f32 0.70710677, %v112_v12  ;;  %v116_v20 = vmul.f32 0.5, %v112_v12 }
  0xef   :  { %173 = verf.f32 %v118_v14 }
  0xf8   :  { %v172_v15 = vpop.eup %171 }
  0xf9   :  { %v121_v17 = vadd.f32 1.0, %v172_v15 }
  0xfb   :  { %v123_v18 = vmul.f32 %v121_v17, %v115_v16 }
  0xfc   :  { %v174_v19 = vpop.eup %173 }
  0xfd   :  { %125 = vst [vmem:[#allocation7] sm:$0xff] %v123_v18  ;;  %v122_v21 = vadd.f32 1.0, %v174_v19 }
  0xff   :  { %v124_v22 = vmul.f32 %v122_v21, %v116_v20 }
 0x101   :  { %126 = vst [vmem:[#allocation7 + $0x8] sm:$0xff] %v124_v22 }
 0x102   :  { %226 = shalt.err (!%p223_p0)
}
 0x103   :  { %138 = dma.vmem_to_hbm [thread:$0]  %s133_s27, 256, %s291_s3, [#allocation4], %s242_s15, %s242_s15, %s243_s16  }
 0x104   :  { %239 = dma.done.wait [#allocation4], 256  }
 0x105   :  { %240 = vsyncadd [#allocation4], 4294967040 }
 0x106   :  { %142 = vsyncpa [#allocation3], 1 }
 0x107   :  { %143 = vsyncpa [#allocation6], 1 }
 0x108   :  { %144 = vsyncpa [#allocation4], 1 }

</bundles_post_ra>
